<compile_context>
chip_gen: v6e
topology: v6e:2x2x1
jax: 0.10.0
libtpu: 0.0.40
codegen_flags: <defaults>
</compile_context>

<pallas_src>
import functools
import math

import jax
import jax.numpy as jnp
from jax.experimental import pallas as pl
from jax.experimental.pallas import tpu as pltpu


def _vmem_capacity_bytes():
    """Physical VMEM per core; conservative fallback (v7x = 64 MiB)."""
    try:
        info = pltpu.get_tpu_info()
        for attr in ("vmem_capacity_bytes", "vmem_size_bytes", "vmem_bytes"):
            v = getattr(info, attr, None)
            if v:
                return int(v)
    except Exception:
        pass
    return 64 * 1024 * 1024


def _self_attention_kernel(xm_ref, xn_ref, mw_ref, *rest, n_valid, tile_n,
                           mask_keys, has_value1, use_bf16, precompute_h,
                           resident_keys):
    # Unpack optional operands (layout fixed by the static flags).
    idx = 0
    if precompute_h:
        h_ref, wv_ref = rest[idx], None
    else:
        h_ref, wv_ref = None, rest[idx]
    idx += 1
    if has_value1:
        wv1_ref = rest[idx]
        idx += 1
    else:
        wv1_ref = None
    o_ref, gm_sc, m_sc, l_sc, acc_sc = rest[idx:]

    j = pl.program_id(2)
    x_m = xm_ref[...]                                    # (C, TM) query/out tile

    @pl.when(j == 0)
    def _init():
        # Folded score weights: gm = (wq^T wk) @ x_m, cast ONCE to the
        # score-matmul dtype (no per-step cast).
        gm = jnp.dot(mw_ref[...], x_m, preferred_element_type=jnp.float32)
        gm_sc[...] = gm.astype(gm_sc.dtype)
        m_sc[...] = jnp.full_like(m_sc, -1e30)
        l_sc[...] = jnp.zeros_like(l_sc)
        acc_sc[...] = jnp.zeros_like(acc_sc)

    # Key-side operands: resident panel sliced at a 128-aligned offset, or a
    # streamed (C, TN) tile.
    if resident_keys:
        off = pl.multiple_of(j * tile_n, 128)
        x_n = xn_ref[:, pl.ds(off, tile_n)]              # (C, TN)
        h = h_ref[:, pl.ds(off, tile_n)] if precompute_h else None
    else:
        x_n = xn_ref[...]
        h = h_ref[...] if precompute_h else None
    if not precompute_h:
        # Small-C mode: gamma-folded value projection recomputed per key tile.
        h = jnp.dot(wv_ref[...], x_n, preferred_element_type=jnp.float32)
        if use_bf16:
            h = h.astype(jnp.bfloat16)

    # s[n, m] = sum_c x_n[c, n] * gm[c, m]  (contract sublane dim of both ->
    # no explicit transpose; ran clean on hardware previously).
    s = jax.lax.dot_general(x_n, gm_sc[...],
                            dimension_numbers=(((0,), (0,)), ((), ())),
                            preferred_element_type=jnp.float32)    # (TN, TM)

    if mask_keys:
        # Padding only ever lives in the (partially valid) last key tile; use a
        # cheap (TN, 1) column predicate and let broadcasting cover the lanes.
        n_idx = j * tile_n + jax.lax.broadcasted_iota(jnp.int32, (tile_n, 1), 0)
        s = jnp.where(n_idx < n_valid, s, -1e30)

    # Online softmax over the key axis (sublanes of s).
    m_prev = m_sc[...]                                    # (1, TM)
    m_new = jnp.maximum(m_prev, jnp.max(s, axis=0, keepdims=True))
    alpha = jnp.exp(m_prev - m_new)
    p = jnp.exp(s - m_new)                                # (TN, TM)
    l_sc[...] = alpha * l_sc[...] + jnp.sum(p, axis=0, keepdims=True)
    if use_bf16:
        p = p.astype(jnp.bfloat16)
    acc_sc[...] = alpha * acc_sc[...] + jnp.dot(h, p, preferred_element_type=jnp.float32)
    m_sc[...] = m_new

    @pl.when(j == pl.num_programs(2) - 1)
    def _finalize():
        l = l_sc[...]
        inv_l = pl.reciprocal(l, approx=True)             # EUP slot
        inv_l = inv_l * (2.0 - l * inv_l)                 # one Newton step, (1, TM)
        attn = acc_sc[...] * inv_l                        # deferred softmax normalize
        if has_value1:
            xv = jnp.dot(wv1_ref[...], x_m, preferred_element_type=jnp.float32)
        else:
            xv = x_m                                      # value1 is None -> residual x
        o_ref[...] = (attn + xv).astype(o_ref.dtype)      # gamma already folded into h


def self_attention_forward(x, params, div, *, tile_m=128, tile_n=256,
                           use_bf16=False, precompute_h=None,
                           resident_keys=None, vmem_budget_bytes=None):
    """x: (B, C, L, 1) float32 (NCHW).  Returns (B, C // div, L, 1)."""
    B, C, L, W = x.shape
    N = L * W
    x_flat = x.reshape(B, C, N).astype(jnp.float32)

    wq, wk, wv = params["wq"], params["wk"], params["wv"]
    wv1 = params.get("wv1", None)
    gamma = params["gamma"]
    Co = wv.shape[0]
    has_value1 = wv1 is not None

    # ---- tile sizing -------------------------------------------------------
    assert tile_m % 128 == 0 and tile_n % 128 == 0
    n128 = pl.cdiv(N, 128) * 128
    tile_m = min(tile_m, n128)
    tile_n = min(tile_n, n128)
    lcm = tile_m * tile_n // math.gcd(tile_m, tile_n)
    n_pad = pl.cdiv(N, lcm) * lcm
    if n_pad - N >= tile_n:
        # Invariant: the last key tile must hold >=1 valid key, otherwise the
        # -1e30 mask of a fully padded tile would corrupt the online softmax.
        tile_n = lcm
    if n_pad != N:
        x_flat = jnp.pad(x_flat, ((0, 0), (0, 0), (0, n_pad - N)))

    # ---- weight folding ----------------------------------------------------
    m_w = jnp.dot(wq.T, wk, preferred_element_type=jnp.float32)      # (C, C)
    wv_g = gamma[0] * wv                                             # fold gamma

    if precompute_h is None:
        precompute_h = C > 64            # hoist value(x) out of the kernel for large C
    key_dtype = jnp.bfloat16 if use_bf16 else jnp.float32
    x_key = x_flat.astype(key_dtype)     # bf16 key DMA when requested
    if precompute_h:
        h_full = jnp.einsum("oc,bcn->bon", wv_g, x_flat).astype(key_dtype)

    # ---- VMEM budget / key residency ---------------------------------------
    key_b = 2 if use_bf16 else 4

    def vmem_estimate(resident):
        cols = n_pad if resident else tile_n
        est = 2 * C * cols * key_b                       # key panel/tile (x2 buffers)
        if precompute_h:
            est += 2 * Co * cols * key_b                 # precomputed value panel/tile
        else:
            est += 2 * Co * C * key_b                    # value weight
        est += 2 * C * tile_m * 4                        # query tile
        est += 2 * Co * tile_m * 4                       # output tile
        est += 2 * C * C * 4                             # folded wq^T wk
        if has_value1:
            est += 2 * Co * C * 4                        # value1 weight
        est += C * tile_m * key_b                        # gm scratch
        est += (Co + 2) * tile_m * 4                     # acc + m + l scratch
        return est

    capacity = _vmem_capacity_bytes()
    budget = int(vmem_budget_bytes) if vmem_budget_bytes else int(0.7 * capacity)
    if resident_keys is None:
        resident_keys = vmem_estimate(True) <= budget

    # ---- specs ---------------------------------------------------------------
    q_spec = pl.BlockSpec((None, C, tile_m), lambda b, i, j: (b, 0, i))
    if resident_keys:
        k_spec = pl.BlockSpec((None, C, n_pad), lambda b, i, j: (b, 0, 0))
        h_spec = pl.BlockSpec((None, Co, n_pad), lambda b, i, j: (b, 0, 0))
    else:
        k_spec = pl.BlockSpec((None, C, tile_n), lambda b, i, j: (b, 0, j))
        h_spec = pl.BlockSpec((None, Co, tile_n), lambda b, i, j: (b, 0, j))

    def w_spec(r, c):
        return pl.BlockSpec((r, c), lambda b, i, j: (0, 0))

    in_specs = [q_spec, k_spec, w_spec(C, C)]
    args = [x_flat, x_key, m_w]
    if precompute_h:
        in_specs.append(h_spec)
        args.append(h_full)
    else:
        in_specs.append(w_spec(Co, C))
        args.append(wv_g.astype(key_dtype))
    if has_value1:
        in_specs.append(w_spec(Co, C))
        args.append(wv1)

    gm_dtype = jnp.bfloat16 if use_bf16 else jnp.float32
    kernel = functools.partial(
        _self_attention_kernel,
        n_valid=N, tile_n=tile_n, mask_keys=(n_pad != N),
        has_value1=has_value1, use_bf16=use_bf16,
        precompute_h=precompute_h, resident_keys=resident_keys)

    out = pl.pallas_call(
        kernel,
        out_shape=jax.ShapeDtypeStruct((B, Co, n_pad), x.dtype),
        grid_spec=pltpu.PrefetchScalarGridSpec(
            num_scalar_prefetch=0,
            grid=(B, n_pad // tile_m, n_pad // tile_n),
            in_specs=in_specs,
            out_specs=pl.BlockSpec((None, Co, tile_m), lambda b, i, j: (b, 0, i)),
            scratch_shapes=[
                pltpu.VMEM((C, tile_m), gm_dtype),     # gm = (wq^T wk) @ x_m
                pltpu.VMEM((1, tile_m), jnp.float32),  # running max
                pltpu.VMEM((1, tile_m), jnp.float32),  # running sum
                pltpu.VMEM((Co, tile_m), jnp.float32), # output accumulator
            ]),
        compiler_params=pltpu.CompilerParams(
            dimension_semantics=("parallel", "parallel", "arbitrary"),
            vmem_limit_bytes=budget),
    )(*args)

    out = out[:, :, :N]
    # matches: o.view(batch, filter / div, Channel, 1)  (module usage has W == 1)
    return out.reshape(B, C // div, L, 1)


def init_params(key, n_channels, div):
    """Deterministic kaiming-normal init matching the module's __init__ shapes."""
    k0, k1, k2, k3 = jax.random.split(key, 4)
    if n_channels > 1:
        cd = n_channels // div
        co = cd if div > 1 else n_channels
        has_value1 = div > 1
    else:
        cd = co = n_channels
        has_value1 = False

    def kaiming(k, out_c, in_c):
        std = (2.0 / in_c) ** 0.5  # kaiming_normal_, fan_in = in_c * ks (ks = 1)
        return (std * jax.random.normal(k, (out_c, in_c))).astype(jnp.float32)

    params = dict(
        wq=kaiming(k0, cd, n_channels),
        wk=kaiming(k1, cd, n_channels),
        wv=kaiming(k2, co, n_channels),
        gamma=jnp.zeros((1,), jnp.float32),  # nn.Parameter(torch.tensor([0.0]))
    )
    if has_value1:
        params["wv1"] = kaiming(k3, co, n_channels)
    return params


def reference_forward(x, params, div):
    """Pure-JAX reference mirroring the PyTorch forward."""
    B, C, L, W = x.shape
    xf = x.reshape(B, C, -1)
    f = jnp.einsum("oc,bcn->bon", params["wq"], xf)
    g = jnp.einsum("oc,bcn->bon", params["wk"], xf)
    h = jnp.einsum("oc,bcn->bon", params["wv"], xf)
    s = jnp.einsum("bcn,bcm->bnm", f, g)          # bmm(f^T, g)
    beta = jax.nn.softmax(s, axis=1)              # softmax over dim=1
    xv = jnp.einsum("oc,bcn->bon", params["wv1"], xf) if "wv1" in params else xf
    o = params["gamma"][0] * jnp.einsum("bon,bnm->bom", h, beta) + xv
    return o.reshape(B, C // div, L, 1)


if __name__ == "__main__":
    key = jax.random.PRNGKey(0)

    # Case 1: div=2 (value1 present), N=16 -> padded to 128 (mask path),
    # resident key panel + in-kernel value projection (small C).
    B, C, L, W, div = 2, 8, 16, 1, 2
    kx, kp, kk = jax.random.split(key, 3)
    x = jax.random.normal(kx, (B, C, L, W), dtype=jnp.float32)
    params = init_params(kp, C, div)

    out = jax.block_until_ready(self_attention_forward(x, params, div))
    ref = reference_forward(x, params, div)
    assert out.shape == (B, C // div, L, 1)
    assert jnp.allclose(out, ref, atol=1e-4, rtol=1e-4)

    # Nonzero gamma -> attention path actually contributes.
    params_g = dict(params, gamma=jnp.array([0.5], jnp.float32))
    out_g = jax.block_until_ready(self_attention_forward(x, params_g, div))
    ref_g = reference_forward(x, params_g, div)
    assert jnp.allclose(out_g, ref_g, atol=1e-4, rtol=1e-4)

    # Streamed-key + precomputed-h operand layout (mask + value1 still active).
    out_s = jax.block_until_ready(self_attention_forward(
        x, params_g, div, precompute_h=True, resident_keys=False))
    assert jnp.allclose(out_s, ref_g, atol=1e-4, rtol=1e-4)

    # bf16 inputs to the two O(N^2) MXU matmuls (f32 accumulation), loose tol.
    out_bf = jax.block_until_ready(
        self_attention_forward(x, params_g, div, use_bf16=True))
    assert jnp.allclose(out_bf, ref_g, atol=5e-2, rtol=5e-2)

    # Case 2: div=1 (value1 is None), N=512 -> TN=256 key tiles (2 key steps),
    # exercising the multi-block online softmax, the resident key panel, the
    # precomputed value panel, and the streamed fallback.
    B2, C2, L2, W2, div2 = 2, 8, 512, 1, 1
    kx2, kp2 = jax.random.split(kk)
    x2 = jax.random.normal(kx2, (B2, C2, L2, W2), dtype=jnp.float32)
    params2 = dict(init_params(kp2, C2, div2), gamma=jnp.array([0.25], jnp.float32))
    ref2 = reference_forward(x2, params2, div2)

    out2 = jax.block_until_ready(self_attention_forward(x2, params2, div2))
    assert out2.shape == (B2, C2, L2, 1)
    assert jnp.allclose(out2, ref2, atol=2e-4, rtol=2e-4)

    out2_h = jax.block_until_ready(
        self_attention_forward(x2, params2, div2, precompute_h=True))
    assert jnp.allclose(out2_h, ref2, atol=2e-4, rtol=2e-4)

    out2_t = jax.block_until_ready(
        self_attention_forward(x2, params2, div2, resident_keys=False))
    assert jnp.allclose(out2_t, ref2, atol=2e-4, rtol=2e-4)

    out2_bf = jax.block_until_ready(self_attention_forward(
        x2, params2, div2, use_bf16=True, precompute_h=True))
    assert jnp.allclose(out2_bf, ref2, atol=5e-2, rtol=5e-2)

    print("KERNEL_OK")
</pallas_src>

<mosaic_0001>
module attributes {stable_mosaic.version = 11 : i64} {
  func.func @_self_attention_kernel(%arg0: i32, %arg1: i32, %arg2: i32, %arg3: memref<1x8x128xf32, #tpu.memory_space<vmem>>, %arg4: memref<1x8x128xf32, #tpu.memory_space<vmem>>, %arg5: memref<8x8xf32, #tpu.memory_space<vmem>>, %arg6: memref<4x8xf32, #tpu.memory_space<vmem>>, %arg7: memref<4x8xf32, #tpu.memory_space<vmem>>, %arg8: memref<1x4x128xf32, #tpu.memory_space<vmem>>, %arg9: memref<8x128xf32, #tpu.memory_space<vmem>>, %arg10: memref<1x128xf32, #tpu.memory_space<vmem>>, %arg11: memref<1x128xf32, #tpu.memory_space<vmem>>, %arg12: memref<4x128xf32, #tpu.memory_space<vmem>>) attributes {dimension_semantics = [#tpu.dimension_semantics<parallel>, #tpu.dimension_semantics<parallel>, #tpu.dimension_semantics<arbitrary>], iteration_bounds = array<i64: 2, 1, 1>, scalar_prefetch = 0 : i64, scratch_operands = 4 : i64, tpu.core_type = #tpu.core_type<tc>, window_params = [{transform_indices = @transform_0, window_bounds = array<i64: 1, 8, 128>}, {transform_indices = @transform_1, window_bounds = array<i64: 1, 8, 128>}, {pipeline_mode = #tpu.pipeline_mode<synchronous>, transform_indices = @transform_2, window_bounds = array<i64: 8, 8>}, {pipeline_mode = #tpu.pipeline_mode<synchronous>, transform_indices = @transform_3, window_bounds = array<i64: 4, 8>}, {pipeline_mode = #tpu.pipeline_mode<synchronous>, transform_indices = @transform_4, window_bounds = array<i64: 4, 8>}, {transform_indices = @transform_5, window_bounds = array<i64: 1, 4, 128>}]} {
    %c0 = arith.constant 0 : index
    %c0_0 = arith.constant 0 : index
    %c0_1 = arith.constant 0 : index
    %0 = vector.load %arg3[%c0, %c0_0, %c0_1] : memref<1x8x128xf32, #tpu.memory_space<vmem>>, vector<1x8x128xf32>
    %1 = vector.shape_cast %0 : vector<1x8x128xf32> to vector<8x128xf32>
    %c0_i32 = arith.constant 0 : i32
    %2 = arith.cmpi eq, %arg2, %c0_i32 : i32
    %3 = arith.extui %2 : i1 to i32
    %c0_i32_2 = arith.constant 0 : i32
    %4 = arith.cmpi ne, %3, %c0_i32_2 : i32
    scf.if %4 {
      %c0_29 = arith.constant 0 : index
      %c0_30 = arith.constant 0 : index
      %49 = vector.load %arg5[%c0_29, %c0_30] : memref<8x8xf32, #tpu.memory_space<vmem>>, vector<8x8xf32>
      %cst_31 = arith.constant dense<0.000000e+00> : vector<8x128xf32>
      %50 = tpu.matmul %49, %1, %cst_31 {dimension_numbers = #tpu.dot_dimension_numbers<[1], [0], [0], [1], [0, 0, 1, 1], [], []>} : vector<8x8xf32>, vector<8x128xf32>, vector<8x128xf32> -> vector<8x128xf32>
      %c0_32 = arith.constant 0 : index
      %c0_33 = arith.constant 0 : index
      %51 = vector.load %arg9[%c0_32, %c0_33] : memref<8x128xf32, #tpu.memory_space<vmem>>, vector<8x128xf32>
      tpu.vector_store %arg9[%c0_32, %c0_33], %50 {strides = array<i32>} : memref<8x128xf32, #tpu.memory_space<vmem>>, vector<8x128xf32>,
      %cst_34 = arith.constant -1.000000e+30 : f32
      %52 = vector.broadcast %cst_34 : f32 to vector<1x128xf32>
      %c0_35 = arith.constant 0 : index
      %c0_36 = arith.constant 0 : index
      %53 = vector.load %arg10[%c0_35, %c0_36] : memref<1x128xf32, #tpu.memory_space<vmem>>, vector<1x128xf32>
      tpu.vector_store %arg10[%c0_35, %c0_36], %52 {strides = array<i32>} : memref<1x128xf32, #tpu.memory_space<vmem>>, vector<1x128xf32>,
      %cst_37 = arith.constant 0.000000e+00 : f32
      %54 = vector.broadcast %cst_37 : f32 to vector<1x128xf32>
      %c0_38 = arith.constant 0 : index
      %c0_39 = arith.constant 0 : index
      %55 = vector.load %arg11[%c0_38, %c0_39] : memref<1x128xf32, #tpu.memory_space<vmem>>, vector<1x128xf32>
      tpu.vector_store %arg11[%c0_38, %c0_39], %54 {strides = array<i32>} : memref<1x128xf32, #tpu.memory_space<vmem>>, vector<1x128xf32>,
      %cst_40 = arith.constant 0.000000e+00 : f32
      %56 = vector.broadcast %cst_40 : f32 to vector<4x128xf32>
      %c0_41 = arith.constant 0 : index
      %c0_42 = arith.constant 0 : index
      %57 = vector.load %arg12[%c0_41, %c0_42] : memref<4x128xf32, #tpu.memory_space<vmem>>, vector<4x128xf32>
      tpu.vector_store %arg12[%c0_41, %c0_42], %56 {strides = array<i32>} : memref<4x128xf32, #tpu.memory_space<vmem>>, vector<4x128xf32>,
    } else {
    }
    %c128_i32 = arith.constant 128 : i32
    %5 = arith.muli %arg2, %c128_i32 : i32
    %6 = tpu.assume_multiple %5, 128 : i32
    %c0_3 = arith.constant 0 : index
    %c0_4 = arith.constant 0 : index
    %7 = arith.index_cast %6 : i32 to index
    %8 = vector.load %arg4[%c0_3, %c0_4, %7] : memref<1x8x128xf32, #tpu.memory_space<vmem>>, vector<1x8x128xf32>
    %9 = vector.shape_cast %8 : vector<1x8x128xf32> to vector<8x128xf32>
    %c0_5 = arith.constant 0 : index
    %c0_6 = arith.constant 0 : index
    %10 = vector.load %arg6[%c0_5, %c0_6] : memref<4x8xf32, #tpu.memory_space<vmem>>, vector<4x8xf32>
    %cst = arith.constant dense<0.000000e+00> : vector<4x128xf32>
    %11 = tpu.matmul %10, %9, %cst {dimension_numbers = #tpu.dot_dimension_numbers<[1], [0], [0], [1], [0, 0, 1, 1], [], []>} : vector<4x8xf32>, vector<8x128xf32>, vector<4x128xf32> -> vector<4x128xf32>
    %c0_7 = arith.constant 0 : index
    %c0_8 = arith.constant 0 : index
    %12 = vector.load %arg9[%c0_7, %c0_8] : memref<8x128xf32, #tpu.memory_space<vmem>>, vector<8x128xf32>
    %cst_9 = arith.constant dense<0.000000e+00> : vector<128x128xf32>
    %13 = tpu.matmul %9, %12, %cst_9 {dimension_numbers = #tpu.dot_dimension_numbers<[0], [0], [1], [1], [0, 1, 1, 1], [], []>} : vector<8x128xf32>, vector<8x128xf32>, vector<128x128xf32> -> vector<128x128xf32>
    %c128_i32_10 = arith.constant 128 : i32
    %14 = arith.muli %arg2, %c128_i32_10 : i32
    %15 = tpu.iota {dimensions = array<i32: 0>} : vector<128x1xi32>
    %16 = vector.broadcast %14 : i32 to vector<128x1xi32>
    %17 = arith.addi %16, %15 : vector<128x1xi32>
    %c16_i32 = arith.constant 16 : i32
    %18 = vector.broadcast %c16_i32 : i32 to vector<128x1xi32>
    %19 = arith.cmpi slt, %17, %18 : vector<128x1xi32>
    %cst_11 = arith.constant -1.000000e+30 : f32
    %20 = vector.shape_cast %19 : vector<128x1xi1> to vector<128x1xi1>
    %21 = vector.broadcast %20 : vector<128x1xi1> to vector<128x128xi1>
    %22 = vector.broadcast %cst_11 : f32 to vector<128x128xf32>
    %23 = arith.select %21, %13, %22 : vector<128x128xi1>, vector<128x128xf32>
    %c0_12 = arith.constant 0 : index
    %c0_13 = arith.constant 0 : index
    %24 = vector.load %arg10[%c0_12, %c0_13] : memref<1x128xf32, #tpu.memory_space<vmem>>, vector<1x128xf32>
    %cst_14 = arith.constant dense<0xFF800000> : vector<128xf32>
    %25 = vector.multi_reduction <maximumf>, %23, %cst_14 [0] : vector<128x128xf32> to vector<128xf32>
    %26 = vector.shape_cast %25 : vector<128xf32> to vector<1x128xf32>
    %27 = arith.maximumf %24, %26 : vector<1x128xf32>
    %28 = arith.subf %24, %27 : vector<1x128xf32>
    %29 = math.exp %28 : vector<1x128xf32>
    %30 = vector.broadcast %27 : vector<1x128xf32> to vector<128x128xf32>
    %31 = arith.subf %23, %30 : vector<128x128xf32>
    %32 = math.exp %31 : vector<128x128xf32>
    %c0_15 = arith.constant 0 : index
    %c0_16 = arith.constant 0 : index
    %33 = vector.load %arg11[%c0_15, %c0_16] : memref<1x128xf32, #tpu.memory_space<vmem>>, vector<1x128xf32>
    %34 = arith.mulf %29, %33 : vector<1x128xf32>
    %cst_17 = arith.constant dense<0.000000e+00> : vector<128xf32>
    %35 = vector.multi_reduction <add>, %32, %cst_17 [0] : vector<128x128xf32> to vector<128xf32>
    %36 = vector.shape_cast %35 : vector<128xf32> to vector<1x128xf32>
    %37 = arith.addf %34, %36 : vector<1x128xf32>
    %c0_18 = arith.constant 0 : index
    %c0_19 = arith.constant 0 : index
    %38 = vector.load %arg11[%c0_18, %c0_19] : memref<1x128xf32, #tpu.memory_space<vmem>>, vector<1x128xf32>
    tpu.vector_store %arg11[%c0_18, %c0_19], %37 {strides = array<i32>} : memref<1x128xf32, #tpu.memory_space<vmem>>, vector<1x128xf32>,
    %c0_20 = arith.constant 0 : index
    %c0_21 = arith.constant 0 : index
    %39 = vector.load %arg12[%c0_20, %c0_21] : memref<4x128xf32, #tpu.memory_space<vmem>>, vector<4x128xf32>
    %40 = vector.broadcast %29 : vector<1x128xf32> to vector<4x128xf32>
    %41 = arith.mulf %40, %39 : vector<4x128xf32>
    %cst_22 = arith.constant dense<0.000000e+00> : vector<4x128xf32>
    %42 = tpu.matmul %11, %32, %cst_22 {dimension_numbers = #tpu.dot_dimension_numbers<[1], [0], [0], [1], [0, 0, 1, 1], [], []>} : vector<4x128xf32>, vector<128x128xf32>, vector<4x128xf32> -> vector<4x128xf32>
    %43 = arith.addf %41, %42 : vector<4x128xf32>
    %c0_23 = arith.constant 0 : index
    %c0_24 = arith.constant 0 : index
    %44 = vector.load %arg12[%c0_23, %c0_24] : memref<4x128xf32, #tpu.memory_space<vmem>>, vector<4x128xf32>
    tpu.vector_store %arg12[%c0_23, %c0_24], %43 {strides = array<i32>} : memref<4x128xf32, #tpu.memory_space<vmem>>, vector<4x128xf32>,
    %c0_25 = arith.constant 0 : index
    %c0_26 = arith.constant 0 : index
    %45 = vector.load %arg10[%c0_25, %c0_26] : memref<1x128xf32, #tpu.memory_space<vmem>>, vector<1x128xf32>
    tpu.vector_store %arg10[%c0_25, %c0_26], %27 {strides = array<i32>} : memref<1x128xf32, #tpu.memory_space<vmem>>, vector<1x128xf32>,
    %c0_i32_27 = arith.constant 0 : i32
    %46 = arith.cmpi eq, %arg2, %c0_i32_27 : i32
    %47 = arith.extui %46 : i1 to i32
    %c0_i32_28 = arith.constant 0 : i32
    %48 = arith.cmpi ne, %47, %c0_i32_28 : i32
    scf.if %48 {
      %c0_29 = arith.constant 0 : index
      %c0_30 = arith.constant 0 : index
      %49 = vector.load %arg11[%c0_29, %c0_30] : memref<1x128xf32, #tpu.memory_space<vmem>>, vector<1x128xf32>
      %50 = tpu.reciprocal %49 {approx = true} : vector<1x128xf32> -> vector<1x128xf32>
      %51 = arith.mulf %49, %50 : vector<1x128xf32>
      %cst_31 = arith.constant 2.000000e+00 : f32
      %52 = vector.broadcast %cst_31 : f32 to vector<1x128xf32>
      %53 = arith.subf %52, %51 : vector<1x128xf32>
      %54 = arith.mulf %50, %53 : vector<1x128xf32>
      %c0_32 = arith.constant 0 : index
      %c0_33 = arith.constant 0 : index
      %55 = vector.load %arg12[%c0_32, %c0_33] : memref<4x128xf32, #tpu.memory_space<vmem>>, vector<4x128xf32>
      %56 = vector.broadcast %54 : vector<1x128xf32> to vector<4x128xf32>
      %57 = arith.mulf %55, %56 : vector<4x128xf32>
      %c0_34 = arith.constant 0 : index
      %c0_35 = arith.constant 0 : index
      %58 = vector.load %arg7[%c0_34, %c0_35] : memref<4x8xf32, #tpu.memory_space<vmem>>, vector<4x8xf32>
      %cst_36 = arith.constant dense<0.000000e+00> : vector<4x128xf32>
      %59 = tpu.matmul %58, %1, %cst_36 {dimension_numbers = #tpu.dot_dimension_numbers<[1], [0], [0], [1], [0, 0, 1, 1], [], []>} : vector<4x8xf32>, vector<8x128xf32>, vector<4x128xf32> -> vector<4x128xf32>
      %60 = arith.addf %57, %59 : vector<4x128xf32>
      %c0_37 = arith.constant 0 : index
      %c0_38 = arith.constant 0 : index
      %c0_39 = arith.constant 0 : index
      %61 = vector.load %arg8[%c0_37, %c0_38, %c0_39] : memref<1x4x128xf32, #tpu.memory_space<vmem>>, vector<1x4x128xf32>
      %62 = vector.shape_cast %61 : vector<1x4x128xf32> to vector<4x128xf32>
      %63 = vector.shape_cast %60 : vector<4x128xf32> to vector<1x4x128xf32>
      tpu.vector_store %arg8[%c0_37, %c0_38, %c0_39], %63 {strides = array<i32>} : memref<1x4x128xf32, #tpu.memory_space<vmem>>, vector<1x4x128xf32>,
    } else {
    }
    return
  }
  func.func @transform_0(%arg0: i32, %arg1: i32, %arg2: i32) -> (i32, i32, i32) {
    %c0_i32 = arith.constant 0 : i32
    %c0_i32_0 = arith.constant 0 : i32
    return %arg0, %c0_i32, %arg1 : i32, i32, i32
  }
  func.func @transform_1(%arg0: i32, %arg1: i32, %arg2: i32) -> (i32, i32, i32) {
    %c0_i32 = arith.constant 0 : i32
    %c0_i32_0 = arith.constant 0 : i32
    %c0_i32_1 = arith.constant 0 : i32
    return %arg0, %c0_i32, %c0_i32_0 : i32, i32, i32
  }
  func.func @transform_2(%arg0: i32, %arg1: i32, %arg2: i32) -> (i32, i32) {
    %c0_i32 = arith.constant 0 : i32
    %c0_i32_0 = arith.constant 0 : i32
    %c0_i32_1 = arith.constant 0 : i32
    return %c0_i32, %c0_i32_0 : i32, i32
  }
  func.func @transform_3(%arg0: i32, %arg1: i32, %arg2: i32) -> (i32, i32) {
    %c0_i32 = arith.constant 0 : i32
    %c0_i32_0 = arith.constant 0 : i32
    %c0_i32_1 = arith.constant 0 : i32
    return %c0_i32, %c0_i32_0 : i32, i32
  }
  func.func @transform_4(%arg0: i32, %arg1: i32, %arg2: i32) -> (i32, i32) {
    %c0_i32 = arith.constant 0 : i32
    %c0_i32_0 = arith.constant 0 : i32
    %c0_i32_1 = arith.constant 0 : i32
    return %c0_i32, %c0_i32_0 : i32, i32
  }
  func.func @transform_5(%arg0: i32, %arg1: i32, %arg2: i32) -> (i32, i32, i32) {
    %c0_i32 = arith.constant 0 : i32
    %c0_i32_0 = arith.constant 0 : i32
    return %arg0, %c0_i32, %arg1 : i32, i32, i32
  }
}

</mosaic_0001>

<bundles_post_ra>
// kernel: tpu_custom_call.1
= control target key start
LH: loop header
LB: loop body
LE: loop exit
PB: predicated region body
PF: predicated region fallthrough
CT: control target
= control target key end

     0   :  { %s1983_s0 = inlined_call_operand.hbm [shape: f32[2,8,128], index: 0, kind: input, shape index: {}]   ;;  %s1984_s1 = inlined_call_operand.hbm [shape: f32[2,8,128], index: 1, kind: input, shape index: {}]   ;;  %s1985_s2 = inlined_call_operand.hbm [shape: f32[8,8], index: 2, kind: input, shape index: {}]   ;;  %s1986_s3 = inlined_call_operand.vmem [shape: f32[4,8], index: 3, kind: input, shape index: {}]   ;;  %s1987_s4 = inlined_call_operand.hbm [shape: f32[4,8], index: 4, kind: input, shape index: {}]   ;;  %s1988_s5 = inlined_call_operand.hbm [shape: f32[2,4,128], index: 5, kind: output, shape index: {}]  }
   0x1   :  { %1992 = sst [smem:[#allocation20_spill]] %s1983_s0 }
   0x2   :  { %1993 = sst [smem:[#allocation21_spill]] %s1984_s1 }
   0x3   :  { %1994 = sst [smem:[#allocation22_spill]] %s1985_s2 }
   0x4   :  { %10 = vsyncpa [#allocation7], 0 }
   0x5   :  { %12 = vsyncpa [#allocation7 + $0x1], 0 }
   0x6   :  { %13 = vsyncpa [#allocation10], 0 }
   0x7   :  { %15 = vsyncpa [#allocation10 + $0x1], 0 }
   0x8   :  { %16 = vsyncpa [#allocation13], 0 }
   0x9   :  { %17 = vsyncpa [#allocation8], 0 }
   0xa   :  { %19 = vsyncpa [#allocation8 + $0x1], 0  ;;  %s1729_s18 = smov 0   ;;  %s1731_s19 = smov 0  }
   0xb   :  { %s1733_s20 = smov 0   ;;  %s1735_s21 = smov 0  }
   0xc   :  { %s1737_s22 = smov 0   ;;  %s1739_s23 = smov 0  }
   0xd LB: > { %s1760_s24 = sadd.s32 4294967295, %s1689_s23   ;;  %s1234_s25 = sadd.s32 4294967294, %s1689_s23   ;;  %s1689_s23 = sphi %s1739_s23, %s25_s23   ;;  %s1685_s22 = sphi %s1737_s22, %s2017_s22   ;;  %s1681_s21 = sphi %s1735_s21, %s2016_s21   ;;  %s1677_s20 = sphi %s1733_s20, %s2015_s20   ;;  %s1673_s19 = sphi %s1731_s19, %s2014_s19   ;;  %s1669_s18 = sphi %s1729_s18, %s2013_s18  }
   0xe   : > { %p66_p0 = scmp.ne.s32.totalorder %s1673_s19, %s1669_s18  ;;  %p1989_p1 = scmp.eq.s32.totalorder %s1760_s24, 0 }
   0xf   : > { %p187_p3 = scmp.eq.s32.totalorder %s1234_s25, 1  ;;  %p1235_p5 = scmp.ge.s32.totalorder %s1689_s23, 1 }
  0x10   : > { %p1769_p4 = por %p1989_p1, %p66_p0  ;;  %p194_p7 = scmp.lt.s32.totalorder %s1689_s23, 3 }
  0x11   : > { %p1774_p6 = por %p187_p3, %p66_p0  ;;  %s1691_s29 = smov [#allocation11]  }
  0x12   : > { %s1995_s26 = scalar_select %p1769_p4, 1, 0 }
  0x13   : > { %s1996_s27 = scalar_select %p1774_p6, 1, 0 }
  0x14   : > { %p1779_p8 = pnand %p1235_p5, %p194_p7  ;;  %s207_s30 = sshll.u32 %s1691_s29, 4  ;;  %s208_s30 = int_to_ptr.vmem [resolvable:$true] %s207_s30 }
  0x15   : > { %s1692_s6 = smov [#allocation12]   ;;  %s1500_s9 = scalar_lea.vmem %s208_s30, 128 }
  0x16   : > { %s1997_s28 = scalar_select %p1779_p8, 1, 0 }
  0x17   : > { %p1402_p10 = pneg %p1779_p8  ;;  %s221_s7 = sshll.u32 %s1692_s6, 4  ;;  %s222_s7 = int_to_ptr.vmem [resolvable:$true] %s221_s7 }
  0x18   : > { %p1501_p13 = scmp.ne.s32.totalorder %s208_s30, %s1500_s9  ;;  %p1508_p5 = scmp.lt.s32.totalorder %s208_s30, %s208_s30 }
  0x19   : > { %p1788_p11 = pnand %p1402_p10, %p1989_p1  ;;  %p1509_p7 = scmp.lt.s32.totalorder %s1500_s9, %s1500_s9 }
  0x1b   : > { %p1491_p12 = pneg %p1788_p11  ;;  %p1510_p9 = por %p1509_p7, %p1508_p5 }
  0x1d   : > { %p1503_p0 = pnand %p1501_p13, %p1491_p12 }
  0x1f   : > { %p1504_p3 = pneg %p1503_p0 }
  0x21   : > { %p1511_p2 = pnand %p1510_p9, %p1504_p3 }
  0x23   : > { %1514 = shalt.err (!%p1511_p2)
}
  0x24   : > { %s1999_s2 = sld [smem:[#allocation22_spill]]  ;;  %s1526_s12 = scalar_lea.vmem %s222_s7, 64 }
  0x25   : > { %p1527_p10 = scmp.ne.s32.totalorder %s222_s7, %s1526_s12  ;;  %p1534_p13 = scmp.lt.s32.totalorder %s222_s7, %s222_s7 }
  0x26   : > { %p1535_p0 = scmp.lt.s32.totalorder %s1526_s12, %s1526_s12 }
  0x27   : > { %p1529_p1 = pnand %p1527_p10, %p1491_p12 }
  0x28   : > { %p1536_p4 = por %p1535_p0, %p1534_p13 }
  0x29   : > { %p1530_p6 = pneg %p1529_p1 }
  0x2a   : > { %1405 = dma.hbm_to_vmem [thread:$0]  (!%p1788_p11), %s1999_s2, 128, %s208_s30, [#allocation10]  }
  0x2b   : > { %p1537_p8 = pnand %p1536_p4, %p1530_p6 }
  0x2d   : > { %1540 = shalt.err (!%p1537_p8)
}
  0x2e   : > { %1408 = dma.hbm_to_vmem [thread:$0]  (!%p1788_p11), %s1987_s4, 64, %s222_s7, [#allocation13]  }
  0x2f   : > { %s44_s15 = sadd.s32 1, %s1685_s22  ;;  %s53_s16 = sadd.s32 1, %s1677_s20 }
  0x30   : > { %p46_p1 = scmp.ge.s32.totalorder %s44_s15, 2  ;;  %p60_p2 = scmp.ne.s32.totalorder %s1677_s20, %s1673_s19 }
  0x31   : > { %p61_p4 = scmp.eq.s32.totalorder %s1689_s23, 0  ;;  %p1422_p6 = scmp.lt.s32.totalorder %s1689_s23, 2 }
  0x32   : > { %s2019_s15 = smov (%p46_p1, %s44_s15), 0  ;;  %p2000_p9 = scmp.eq.s32.totalorder %s1760_s24, 1 }
  0x33   : > { %p62_p8 = por %p61_p4, %p60_p2  ;;  %s48_s25 = ssub.s32 %s1685_s22, %s2019_s15 }
  0x34   : > { %p1820_p12 = por %p2000_p9, %p60_p2  ;;  %s232_s29 = sand.u32 1, %s1677_s20  }
  0x35   : > { %p51_p3 = scmp.eq.s32.totalorder %s48_s25, 0  ;;  %s1239_s30 = sshll.u32 %s232_s29, 3 }
  0x36   : > { %s1240_s6 = sshll.u32 %s1685_s22, 7  ;;  %s2002_s0 = sld [smem:[#allocation20_spill]] }
  0x37   : > { %s1829_s7 = scalar_select %p51_p3, %s1677_s20, %s53_s16  }
  0x38   : > { %s236_s11 = scalar_lea.vmem [#allocation6], %s1239_s30  ;;  %p1836_p11 = pnand %p1422_p6, %p62_p8 }
  0x39   : > { %s244_s12 = sshll.u32 %s236_s11, 4  ;;  %s2004_s1 = sld [smem:[#allocation21_spill]]  ;;  %s245_s12 = int_to_ptr.vmem [resolvable:$true] %s244_s12 }
  0x3a   : > { %s233_s16 = scalar_lea.sflag [#allocation7], %s232_s29  ;;  %p1543_p5 = pneg %p1836_p11 }
  0x3b   : > { %s1554_s8 = scalar_lea.vmem %s245_s12, 128  ;;  %s1693_s9 = smov [#allocation6]  }
  0x3c   : > { %s242_s10 = scalar_lea.hbm %s2002_s0, %s1240_s6  ;;  %p1555_p7 = scmp.ne.s32.totalorder %s245_s12, %s1554_s8 }
  0x3d   : > { %s1559_s11 = sshll.u32 %s1693_s9, 4  ;;  %s1560_s11 = int_to_ptr.vmem [resolvable:$false] %s1559_s11 }
  0x3e   : > { %p1557_p10 = pnand %p1555_p7, %p1543_p5  ;;  %s1561_s0 = scalar_lea.vmem %s1560_s11, 256 }
  0x3f   : > { %s1843_s2 = scalar_lea.hbm %s2004_s1, %s1240_s6  ;;  %p1562_p0 = scmp.lt.s32.totalorder %s245_s12, %s1560_s11 }
  0x40   : > { %p1558_p13 = pneg %p1557_p10  ;;  %p1563_p1 = scmp.lt.s32.totalorder %s1561_s0, %s1554_s8 }
  0x42   : > { %p1564_p2 = por %p1563_p1, %p1562_p0 }
  0x44   : > { %p1565_p4 = pnand %p1564_p2, %p1558_p13 }
  0x46   : > { %1568 = shalt.err (!%p1565_p4)
}
  0x47   : > { %1412 = dma.hbm_to_vmem [thread:$0]  (!%p1836_p11), %s242_s10, 128, %s245_s12, %s233_s16  }
  0x48   : > { %s251_s29 = sand.u32 1, %s1689_s23   ;;  %s255_s6 = scalar_lea.vmem [#allocation9], %s1239_s30 }
  0x49   : > { %s262_s14 = sshll.u32 %s255_s6, 4  ;;  %s252_s25 = scalar_lea.sflag [#allocation10], %s251_s29  ;;  %s263_s14 = int_to_ptr.vmem [resolvable:$true] %s262_s14 }
  0x4a   : > { %s1582_s1 = scalar_lea.vmem %s263_s14, 128  ;;  %s1694_s0 = smov [#allocation9]  }
  0x4b   : > { %p1583_p6 = scmp.ne.s32.totalorder %s263_s14, %s1582_s1  ;;  %s1587_s8 = sshll.u32 %s1694_s0, 4  ;;  %s1588_s8 = int_to_ptr.vmem [resolvable:$false] %s1587_s8 }
  0x4c   : > { %s1589_s9 = scalar_lea.vmem %s1588_s8, 256  ;;  %p1590_p3 = scmp.lt.s32.totalorder %s263_s14, %s1588_s8 }
  0x4d   : > { %p1585_p8 = pnand %p1583_p6, %p1543_p5  ;;  %p1591_p7 = scmp.lt.s32.totalorder %s1589_s9, %s1582_s1 }
  0x4f   : > { %p1586_p9 = pneg %p1585_p8  ;;  %p1592_p10 = por %p1591_p7, %p1590_p3 }
  0x51   : > { %p1593_p13 = pnand %p1592_p10, %p1586_p9 }
  0x53   : > { %1596 = shalt.err (!%p1593_p13)
}
  0x54   : > { %1415 = dma.hbm_to_vmem [thread:$0]  (!%p1836_p11), %s1843_s2, 128, %s263_s14, %s252_s25  }
  0x55   : > { %p2005_p0 = scmp.ne.s32.totalorder %s1997_s28, 0 }
  0x56   : > { %s1862_s30 = sand.u32 (!%p2005_p0), 1, %s1673_s19   ;;  %p2006_p5 = scmp.ne.s32.totalorder (!%p2005_p0), %s1995_s26, 0 }
  0x57   : > { %271 = sbr.rel (%p2005_p0) target bundleno = 794 (0x31a), region = 40  ;;  %s1244_s10 = sshll.u32 (!%p2005_p0), %s1862_s30, 3 }
  0x58   : > { %s274_s12 = scalar_lea.sflag (!%p2005_p0), [#allocation7], %s1862_s30  ;;  %s277_s16 = scalar_lea.vmem (!%p2005_p0), [#allocation6], %s1244_s10 }
  0x5c   : > { %1648 = dma.done.wait (%p2006_p5), %s274_s12, 128  }
  0x5d   : > { %1650 = vsyncadd (%p2006_p5), %s274_s12, 4294967168  ;;  %s282_s1 = sand.u32 1, %s1760_s24   ;;  %s286_s28 = scalar_lea.vmem [#allocation9], %s1244_s10 }
  0x5e   : > { %s283_s2 = scalar_lea.sflag [#allocation10], %s282_s1 }
  0x5f   : > { %1652 = dma.done.wait (%p2006_p5), %s283_s2, 128  }
  0x60   : > { %1654 = vsyncadd (%p2006_p5), %s283_s2, 4294967168  ;;  %p2007_p11 = scmp.eq.s32.totalorder %s1760_s24, 0 }
  0x62   : > { %1656 = dma.done.wait (%p2007_p11), [#allocation10], 128   ;;  %p2008_p1 = pmov %p2007_p11 }
  0x64   : > { %1658 = vsyncadd (%p2008_p1), [#allocation10], 4294967168  ;;  %p2009_p2 = pmov %p2008_p1 }
  0x65   : > { %p2010_p4 = pmov %p2008_p1 }
  0x66   : > { %1660 = dma.done.wait (%p2009_p2), [#allocation13], 64  }
  0x67   : > { %1662 = vsyncadd (%p2010_p4), [#allocation13], 4294967232  ;;  %v1695_v0 = vmov 0.0   ;;  %vm1696_vm0 = vmmov 0   ;;  %vm332_vm1 = vcmask 64512   ;;  %v326_v1 = vld [vmem:[%s277_s16] sm:$0xff]  ;;  %v841_v39 = vlaneseq }
  0x68   : > { %1312 = vmatprep.subr.mxu0 %v1695_v0  ;;  %408 = vst [vmem:[#allocation4] sm:$0x1] %v1695_v0  ;;  %409 = vst [vmem:[#allocation5] sm:$0xf] %v1695_v0  ;;  %1314 = vmatprep.mubr.msk.f32.mxu0 %vm1696_vm0, %v1695_v0  ;;  %v331_v2 = vld [vmem:[#allocation11] sm:$0xff]  ;;  %v414_v3 = vld [vmem:[%s286_s28] sm:$0xff] }
  0x69   : > { %1317 = vmatprep.subr.mxu1 %v1695_v0  ;;  %1319 = vmatprep.mubr.msk.f32.mxu1 %vm1696_vm0, %v1695_v0  ;;  %v415_v4 = vld [vmem:[%s1986_s3] sm:$0xf]  ;;  %v1697_v9 = vmov -1e+30   ;;  %v1016_v26 = vld [vmem:[#allocation12] sm:$0xf] }
  0x6a   : > { %1313 = vmatpush3.msra.mxu0 %v326_v1  ;;  %491 = vxpose.xlu0.b32.start.end [1/1] (short) %v414_v3, 128  ;;  %407 = vst [vmem:[#allocation3] sm:$0x1] %v1697_v9  ;;  %v842_v42 = vshrl.u32 %v841_v39, 7  ;;  %s1248_s13 = sshll.u32 %s1862_s30, 2  ;;  %s1269_s11 = sshll.u32 %s1681_s21, 6 }
  0x6b   : > { %1315 = vmatmul.mubr.msk.f32.vlgmr.msra.gmra.mxu0 %vm332_vm1, %v331_v2  ;;  %1318 = vmatpush3.msra.mxu1 %v414_v3  ;;  %s325_s29 = scalar_lea.vmem [#allocation14], %s1248_s13  ;;  %s1105_s0 = scalar_lea.hbm %s1988_s5, %s1269_s11 }
  0x6c   : > { %1348 = vmatprep.subr.mxu1 %v1695_v0  ;;  %1320 = vmatmul.mubr.msk.f32.vlgmr.msra.gmra.mxu1 %vm332_vm1, %v415_v4  ;;  %v1921_v46 = vsub.s32 0, %v842_v42  ;;  %s1107_s6 = sshll.u32 %s325_s29, 4  ;;  %s1093_s8 = scalar_lea.sflag [#allocation8], %s1862_s30  ;;  %s1108_s6 = int_to_ptr.vmem [resolvable:$true] %s1107_s6 }
  0x6d   : > { %1380 = vmatprep.mubr.msk.f32.mxu1 %vm1696_vm0, %v1695_v0  ;;  %s1597_s9 = scalar_lea.vmem %s1108_s6, 64  ;;  %s1698_s10 = smov [#allocation14]  }
  0x6e   : > { %p1598_p6 = scmp.ne.s32.totalorder %s1108_s6, %s1597_s9  ;;  %s1601_s12 = sshll.u32 %s1698_s10, 4  ;;  %s1602_s12 = int_to_ptr.vmem [resolvable:$false] %s1601_s12 }
  0x6f   : > { %s1603_s21 = scalar_lea.vmem %s1602_s12, 128  ;;  %p1604_p3 = scmp.lt.s32.totalorder %s1108_s6, %s1602_s12 }
  0x70   : > { %p1599_p8 = pnand %p1598_p6, %p1820_p12  ;;  %p1605_p7 = scmp.lt.s32.totalorder %s1603_s21, %s1597_s9 }
  0x71   : > { %v814_v44 = vld [vmem:[#allocation3] sm:$0x1] }
  0x72   : > { %p1600_p9 = pneg %p1599_p8  ;;  %p1606_p10 = por %p1605_p7, %p1604_p3 }
  0x74   : > { %p1607_p13 = pnand %p1606_p10, %p1600_p9 }
  0xe6   : > { %v507_v5 = vpop.trf.xlu0 }
  0xe7   : > { %1324 = vmatprep.mubr.msk.f32.mxu0 %vm332_vm1, %v507_v5 }
  0xea   : > { %v508_v7 = vpop.trf.xlu0 }
  0xee   : > { %v509_v10 = vpop.trf.xlu0 }
  0xf2   : > { %v510_v11 = vpop.trf.xlu0 }
  0xf6   : > { %v511_v12 = vpop.trf.xlu0 }
  0xfa   : > { %v512_v13 = vpop.trf.xlu0 }
  0xfe   : > { %v513_v14 = vpop.trf.xlu0 }
 0x102   : > { %v514_v15 = vpop.trf.xlu0 }
 0x106   : > { %v515_v16 = vpop.trf.xlu0 }
 0x10a   : > { %v516_v17 = vpop.trf.xlu0 }
 0x10e   : > { %v517_v18 = vpop.trf.xlu0 }
 0x112   : > { %v518_v19 = vpop.trf.xlu0 }
 0x116   : > { %v519_v20 = vpop.trf.xlu0 }
 0x11a   : > { %v520_v21 = vpop.trf.xlu0 }
 0x11e   : > { %v521_v24 = vpop.trf.xlu0 }
 0x122   : > { %v522_v25 = vpop.trf.xlu0 }
 0x12b   : > { %v402_v6 = vpop.f32.mrf.mxu0 }
 0x12c   : > { %1322 = vmatprep.subr.mxu0 %v402_v6  ;;  %v1913_v22 = vpop.f32.mrf.mxu1 }
 0x12d   : > { %v1316_v8 = vpop.f32.mrf.mxu0  ;;  %1323 = vmatpush3.msra.mxu0 %v402_v6 }
 0x12e   : > { %1325 = vmatmul.mubr.msk.f32.vlgmr.msra.gmra.mxu0 %vm332_vm1, %v508_v7  ;;  %1383 = vmatprep.subr.mxu0 %v1695_v0  ;;  %v1321_v23 = vpop.f32.mrf.mxu1 }
 0x12f   : > { %1384 = vmatpush3.msra.mxu0 %v326_v1  ;;  %1327 = vmatprep.mubr.msk.f32.mxu0 %vm332_vm1, %v509_v10 }
 0x132   : > { %1328 = vmatmul.mubr.msk.f32.gmra.mxu0 %vm332_vm1, %v510_v11 }
 0x133   : > { %1330 = vmatprep.mubr.msk.f32.mxu0 %vm332_vm1, %v511_v12 }
 0x136   : > { %1331 = vmatmul.mubr.msk.f32.gmra.mxu0 %vm332_vm1, %v512_v13 }
 0x137   : > { %1333 = vmatprep.mubr.msk.f32.mxu0 %vm332_vm1, %v513_v14 }
 0x13a   : > { %1334 = vmatmul.mubr.msk.f32.gmra.mxu0 %vm332_vm1, %v514_v15 }
 0x13b   : > { %1336 = vmatprep.mubr.msk.f32.mxu0 %vm332_vm1, %v515_v16 }
 0x13e   : > { %1337 = vmatmul.mubr.msk.f32.gmra.mxu0 %vm332_vm1, %v516_v17  ;;  %v894_v17 = vld [vmem:[#allocation4] sm:$0x1] }
 0x13f   : > { %1339 = vmatprep.mubr.msk.f32.mxu0 %vm332_vm1, %v517_v18 }
 0x142   : > { %1340 = vmatmul.mubr.msk.f32.gmra.mxu0 %vm332_vm1, %v518_v19 }
 0x143   : > { %1342 = vmatprep.mubr.msk.f32.mxu0 %vm332_vm1, %v519_v20 }
 0x146   : > { %1343 = vmatmul.mubr.msk.f32.gmra.mxu0 %vm332_vm1, %v520_v21 }
 0x147   : > { %1345 = vmatprep.mubr.msk.f32.mxu0 %vm332_vm1, %v521_v24 }
 0x14a   : > { %1346 = vmatmul.mubr.msk.f32.gmra.mxu0 %vm332_vm1, %v522_v25 }
 0x14b   : > { %1385 = vmatprep.mubr.msk.f32.mxu0 %vm1696_vm0, %v1695_v0 }
 0x14e   : > { %1386 = vmatmul.mubr.msk.f32.vlgmr.msra.gmra.mxu0 %vm332_vm1, %v1016_v26 }
 0x1ee   : > { %v1326_v27 = vpop.f32.mrf.mxu0 }
 0x1ef   : > { %v816_v28 = vmax.f32 %v1326_v27, -1e+30 }
 0x1f0   : > { %v637_v29 = vpop.f32.mrf.mxu0 }
 0x1f1   : > { %v820_v30 = vmax.f32 %v816_v28, -1e+30  ;;  %v815_v31 = vmax.f32 %v637_v29, -1e+30 }
 0x1f2   : > { %v1329_v23 = vpop.f32.mrf.mxu0 }
 0x1f3   : > { %v819_v32 = vmax.f32 %v815_v31, -1e+30  ;;  %v824_v33 = vmax.f32 %v820_v30, -1e+30 }
 0x1f4   : > { %v647_v24 = vpop.f32.mrf.mxu0 }
 0x1f5   : > { %v823_v34 = vmax.f32 %v819_v32, -1e+30 }
 0x1f6   : > { %v1332_v25 = vpop.f32.mrf.mxu0 }
 0x1f7   : > { %v827_v35 = vmax.f32 %v823_v34, %v824_v33 }
 0x1f8   : > { %v657_v26 = vpop.f32.mrf.mxu0 }
 0x1f9   : > { %v829_v36 = vmax.f32 %v827_v35, -1e+30 }
 0x1fb   : > { %v830_v37 = vrot.slane %v829_v36, 4 }
 0x1fd   : > { %v831_v38 = vmax.f32 %v829_v36, %v830_v37 }
 0x1ff   : > { %v832_v40 = vrot.slane %v831_v38, 2 }
 0x201   : > { %v833_v41 = vmax.f32 %v831_v38, %v832_v40  ;;  %v919_v40 = vld [vmem:[#allocation5] sm:$0xf] }
 0x203   : > { %v834_v43 = vrot.slane %v833_v41, 1 }
 0x205   : > { %v835_v45 = vmax.f32 %v833_v41, %v834_v43 }
 0x207   : > { %v836_v47 = vmax.f32 %v814_v44, %v835_v45 }
 0x209   : > { %v844_v48 = vrot.slane %v836_v47, %v1921_v46  ;;  %999 = vst [vmem:[#allocation3] sm:$0x1] %v836_v47  ;;  %v837_v3 = vsub.f32 %v814_v44, %v836_v47 }
 0x20b   : > { %v846_v49 = vsub.f32 %v637_v29, %v844_v48  ;;  %v847_v50 = vsub.f32 %v1326_v27, %v844_v48  ;;  %v848_v51 = vsub.f32 -1e+30, %v844_v48  ;;  %v838_v6 = vmul.f32 1.442695, %v837_v3  ;;  %v1335_v27 = vpop.f32.mrf.mxu0 }
 0x20d   : > { %v862_v52 = vmul.f32 1.442695, %v846_v49  ;;  %v864_v53 = vmul.f32 1.442695, %v847_v50  ;;  %v866_v54 = vmul.f32 1.442695, %v848_v51  ;;  %v667_v28 = vpop.f32.mrf.mxu0 }
 0x20f   : > { %1479 = vpow2.f32 %v862_v52 }
 0x210   : > { %1481 = vpow2.f32 %v864_v53 }
 0x211   : > { %1483 = vpow2.f32 %v866_v54 }
 0x212   : > { %1485 = vpow2.f32 %v838_v6 }
 0x21c   : > { %v1480_v55 = vpop.eup %1479 }
 0x21d   : > { %v1482_v56 = vpop.eup %1481 }
 0x21e   : > { %v1484_v57 = vpop.eup %1483  ;;  %v896_v58 = vadd.f32 %v1482_v56, %v1480_v55 }
 0x21f   : > { %1349 = vmatpush3.msra.mxu1 %v1484_v57  ;;  %v1486_v16 = vpop.eup %1485 }
 0x220   : > { %v897_v59 = vadd.f32 %v1484_v57, %v896_v58  ;;  %1350 = vmatprep.subr.mxu1 %v1695_v0  ;;  %v895_v19 = vmul.f32 %v1486_v16, %v894_v17  ;;  %v924_v39 = vrot.slane %v1486_v16, %v1921_v46 }
 0x221   : > { %1351 = vmatpush3.msra.mxu1 %v1484_v57 }
 0x222   : > { %v898_v60 = vadd.f32 %v1484_v57, %v897_v59  ;;  %1352 = vmatprep.subr.mxu1 %v1695_v0  ;;  %v926_v42 = vmul.f32 %v924_v39, %v919_v40 }
 0x223   : > { %1353 = vmatpush3.msra.mxu1 %v1484_v57 }
 0x224   : > { %v899_v61 = vadd.f32 %v1484_v57, %v898_v60  ;;  %1354 = vmatprep.subr.mxu1 %v1695_v0 }
 0x225   : > { %1355 = vmatpush3.msra.mxu1 %v1484_v57 }
 0x226   : > { %v900_v62 = vadd.f32 %v1484_v57, %v899_v61  ;;  %1356 = vmatprep.subr.mxu1 %v1695_v0 }
 0x227   : > { %1357 = vmatpush3.msra.mxu1 %v1484_v57 }
 0x228   : > { %v901_v63 = vadd.f32 %v1484_v57, %v900_v62  ;;  %1358 = vmatprep.subr.mxu1 %v1695_v0 }
 0x229   : > { %1359 = vmatpush3.msra.mxu1 %v1484_v57 }
 0x22a   : > { %v902_v1 = vadd.f32 %v1484_v57, %v901_v63  ;;  %1360 = vmatprep.subr.mxu1 %v1695_v0 }
 0x22b   : > { %1361 = vmatpush3.msra.mxu1 %v1484_v57 }
 0x22c   : > { %v903_v2 = vadd.f32 %v1484_v57, %v902_v1  ;;  %1362 = vmatprep.subr.mxu1 %v1695_v0 }
 0x22d   : > { %1363 = vmatpush3.msra.mxu1 %v1484_v57 }
 0x22e   : > { %v904_v4 = vadd.f32 %v1484_v57, %v903_v2  ;;  %1364 = vmatprep.subr.mxu1 %v1695_v0 }
 0x22f   : > { %1365 = vmatpush3.msra.mxu1 %v1484_v57 }
 0x230   : > { %v905_v5 = vadd.f32 %v1484_v57, %v904_v4  ;;  %1366 = vmatprep.subr.mxu1 %v1695_v0 }
 0x231   : > { %1367 = vmatpush3.msra.mxu1 %v1484_v57 }
 0x232   : > { %v906_v7 = vadd.f32 %v1484_v57, %v905_v5  ;;  %1368 = vmatprep.subr.mxu1 %v1695_v0 }
 0x233   : > { %1369 = vmatpush3.msra.mxu1 %v1484_v57 }
 0x234   : > { %v907_v8 = vadd.f32 %v1484_v57, %v906_v7  ;;  %1370 = vmatprep.subr.mxu1 %v1695_v0 }
 0x235   : > { %1371 = vmatpush3.msra.mxu1 %v1484_v57 }
 0x236   : > { %v908_v9 = vadd.f32 %v1484_v57, %v907_v8  ;;  %1372 = vmatprep.subr.mxu1 %v1695_v0 }
 0x237   : > { %1373 = vmatpush3.msra.mxu1 %v1484_v57 }
 0x238   : > { %v909_v10 = vadd.f32 %v1484_v57, %v908_v9  ;;  %1374 = vmatprep.subr.mxu1 %v1695_v0 }
 0x239   : > { %1375 = vmatpush3.msra.mxu1 %v1484_v57 }
 0x23a   : > { %v910_v11 = vadd.f32 %v1484_v57, %v909_v10  ;;  %1376 = vmatprep.subr.mxu1 %v1695_v0 }
 0x23b   : > { %1377 = vmatpush3.msra.mxu1 %v1482_v56 }
 0x23c   : > { %v911_v12 = vrot.slane %v910_v11, 4  ;;  %1378 = vmatprep.subr.mxu1 %v1695_v0  ;;  %v1338_v0 = vpop.f32.mrf.mxu0 }
 0x23d   : > { %1379 = vmatpush3.msra.mxu1 %v1480_v55 }
 0x23e   : > { %v912_v13 = vadd.f32 %v911_v12, %v910_v11  ;;  %1381 = vmatmul.mubr.f32.vlgmr.msra.gmra.mxu1 %v1913_v22  ;;  %v677_v29 = vpop.f32.mrf.mxu0 }
 0x240   : > { %v913_v14 = vrot.slane %v912_v13, 2  ;;  %v1341_v30 = vpop.f32.mrf.mxu0 }
 0x242   : > { %v914_v15 = vadd.f32 %v913_v14, %v912_v13  ;;  %v687_v31 = vpop.f32.mrf.mxu0 }
 0x244   : > { %v915_v18 = vrot.slane %v914_v15, 1  ;;  %v1344_v22 = vpop.f32.mrf.mxu0 }
 0x246   : > { %v916_v20 = vadd.f32 %v915_v18, %v914_v15  ;;  %v697_v32 = vpop.f32.mrf.mxu0 }
 0x248   : > { %v917_v21 = vadd.f32 %v916_v20, %v895_v19  ;;  %v1347_v33 = vpop.f32.mrf.mxu0 }
 0x24a   : > { %918 = vst [vmem:[#allocation4] sm:$0x1] %v917_v21  ;;  %v707_v34 = vpop.f32.mrf.mxu0 }
 0x24c   : > { %v1086_v35 = vpop.f32.mrf.mxu0 }
 0x24e   : > { %v1387_v36 = vpop.f32.mrf.mxu0 }
 0x251   : > { %v1003_v37 = vld [vmem:[#allocation4] sm:$0x1] }
 0x252   : > { %1487 = vrcp.f32 %v1003_v37 }
 0x25f   : > { %v1488_v38 = vpop.eup %1487 }
 0x260   : > { %v1005_v41 = vmul.f32 %v1488_v38, %v1003_v37 }
 0x262   : > { %v1006_v45 = vsub.f32 2.0, %v1005_v41 }
 0x264   : > { %v1007_v48 = vmul.f32 %v1488_v38, %v1006_v45 }
 0x266   : > { %v1013_v49 = vrot.slane %v1007_v48, %v1921_v46 }
 0x2fe   : > { %v993_v43 = vpop.f32.mrf.mxu1 }
 0x2ff   : > { %v997_v44 = vadd.f32 %v993_v43, %v926_v42 }
 0x300   : > { %v1382_v47 = vpop.f32.mrf.mxu1 }
 0x301   : > { %998 = vst [vmem:[#allocation5] sm:$0xf] %v997_v44 }
 0x308   : > { %v1008_v50 = vld [vmem:[#allocation5] sm:$0xf] }
 0x309   : > { %v1015_v51 = vmul.f32 %v1013_v49, %v1008_v50 }
 0x30b   : > { %v1090_v52 = vadd.f32 %v1086_v35, %v1015_v51 }
 0x30d   : > { %1091 = vst [vmem:[%s325_s29] sm:$0xf] %v1090_v52 }
 0x30e   : > { %1610 = shalt.err (!%p1607_p13)
}
 0x30f   : > { %s1611_s16 = scalar_lea.hbm %s1105_s0, 64  ;;  %s1615_s2 = scalar_lea.hbm %s1988_s5, 128 }
 0x310   : > { %p1612_p0 = scmp.ne.s32.totalorder %s1105_s0, %s1611_s16  ;;  %p1616_p1 = scmp.lt.s32.totalorder %s1105_s0, %s1988_s5 }
 0x311   : > { %p1617_p2 = scmp.lt.s32.totalorder %s1615_s2, %s1611_s16 }
 0x312   : > { %p1613_p5 = pnand %p1612_p0, %p1820_p12 }
 0x313   : > { %p1618_p4 = por %p1617_p2, %p1616_p1 }
 0x314   : > { %p1614_p11 = pneg %p1613_p5 }
 0x316   : > { %p1619_p6 = pnand %p1618_p4, %p1614_p11 }
 0x318   : > { %1622 = shalt.err (!%p1619_p6)
}
 0x319   : > { %1400 = dma.vmem_to_hbm [thread:$0]  (%p1820_p12), %s1108_s6, 64, %s1105_s0, %s1093_s8  }
 0x31a PF: > { %s1119_s26 = sand.u32 1, %s1669_s18   ;;  %p2011_p8 = scmp.ne.s32.totalorder %s1996_s27, 0 }
 0x31b   : > { %p2012_p9 = scmp.ge.s32.totalorder %s1689_s23, 2  ;;  %s1120_s13 = scalar_lea.sflag [#allocation8], %s1119_s26 }
 0x31d   : > { %p1417_p3 = pnand %p2012_p9, %p2011_p8 }
 0x31f   : > { %p1418_p7 = pneg %p1417_p3 }
 0x321   : > { %1664 = dma.done.wait (%p1418_p7), %s1120_s13, 64  }
 0x322   : > { %1666 = vsyncadd (%p1418_p7), %s1120_s13, 4294967232  ;;  %s25_s23 = sadd.s32 1, %s1689_s23   ;;  %s2013_s18 = smov %s1673_s19 }
 0x323   : > { %p22_p10 = scmp.ge.s32.totalorder %s25_s23, 4   ;;  %s2014_s19 = smov %s1677_s20 }
 0x324   : > { %s2015_s20 = smov %s1829_s7  ;;  %s2016_s21 = smov %s1685_s22 }
 0x325   : > { %s2017_s22 = smov %s2019_s15  ;;  %24 = sbr.rel (!%p22_p10) target bundleno = 13 (0xd), region = 115 }
 0x32a   :  { %1125 = vsyncpa [#allocation7], 1 }
 0x32b   :  { %1127 = vsyncpa [#allocation7 + $0x1], 1 }
 0x32c   :  { %1128 = vsyncpa [#allocation10], 1 }
 0x32d   :  { %1130 = vsyncpa [#allocation10 + $0x1], 1 }
 0x32e   :  { %1131 = vsyncpa [#allocation13], 1 }
 0x32f   :  { %1132 = vsyncpa [#allocation8], 1 }
 0x330   :  { %1134 = vsyncpa [#allocation8 + $0x1], 1 }

</bundles_post_ra>
